<compile_context>
chip_gen: v6e
topology: v6e:2x2x1
jax: 0.10.0
libtpu: 0.0.40
codegen_flags: <defaults>
</compile_context>

<pallas_src>
import functools

import jax
import jax.numpy as jnp
import numpy as np
from jax.experimental import pallas as pl
from jax.experimental.pallas import tpu as pltpu


def _fold_rows_to_8(v):
    """Reduce (rows, C) -> (8, C) with sublane-aligned halving adds (VPU only).

    Requires rows to be 8 * power-of-two (guaranteed by the wrapper's tile
    size choice)."""
    rows = v.shape[0]
    while rows > 8:
        half = rows // 2
        v = v[:half, :] + v[half:rows, :]
        rows = half
    return v


def _dice_partial_kernel(x_ref, t_ref, ip_ref, ps_ref, ys_ref, *,
                         tile_n, n_classes, n_valid, padded_n, alpha):
    """Per-tile partial sums for the multi-class dice loss.

    Writes three (8, C) partial-sum blocks per grid step:
      ip_ref: sum_i p[i, c] * onehot(y)[i, c]   (intersection)
      ps_ref: sum_i p[i, c]
      ys_ref: sum_i onehot(y)[i, c]
    """
    x = x_ref[...]                                            # (tile_n, C) f32 logits
    # softmax over the class axis (with_logits=True)
    m = jnp.max(x, axis=-1, keepdims=True)
    e = jnp.exp(x - m)
    inv = pl.reciprocal(jnp.sum(e, axis=-1, keepdims=True), approx=False)
    p = e * inv

    # dsc alpha transform, elided at trace time for the default alpha == 0
    # (also avoids the pow(0, 0) / exp(0 * log(0)) NaN hazard).
    if alpha != 0.0:
        base = jnp.maximum(1.0 - p, 0.0)
        w = jnp.where(base > 0.0,
                      jnp.exp(jnp.float32(alpha) * jnp.log(base)),
                      jnp.float32(0.0))
        p = w * p

    # one compare replaces the explicit float one-hot + multiply
    cls = jax.lax.broadcasted_iota(jnp.int32, (tile_n, n_classes), 1)
    is_y = t_ref[...] == cls                                  # (tile_n, C) bool

    if padded_n != n_valid:
        # mask out padded tail rows (trace-time elided when N divides evenly)
        i = pl.program_id(0)
        row = jax.lax.broadcasted_iota(jnp.int32, (tile_n, 1), 0) + i * tile_n
        valid = row < n_valid                                 # (tile_n, 1) bool
        is_y = jnp.logical_and(is_y, valid)
        p_for_sum = jnp.where(valid, p, jnp.float32(0.0))
    else:
        p_for_sum = p

    y_f = is_y.astype(jnp.float32)
    ip = jnp.where(is_y, p, jnp.float32(0.0))

    ip_ref[0] = _fold_rows_to_8(ip)
    ps_ref[0] = _fold_rows_to_8(p_for_sum)
    ys_ref[0] = _fold_rows_to_8(y_f)


def dice_loss_pallas(logits, target, *, smooth=0.0001, alpha=0.0,
                     max_tile_n=2048):
    """logits: (N, C) float32, target: (N,) int32. Returns scalar float32 loss."""
    n, c = logits.shape
    n = int(n)
    c = int(c)

    # tile_n = 8 * power-of-two, as large as possible up to max_tile_n
    tile_n = 1 << max(3, (n - 1).bit_length())     # next_pow2(n), >= 8
    tile_n = min(tile_n, max_tile_n)
    num_tiles = -(-n // tile_n)                    # cdiv
    padded_n = num_tiles * tile_n

    target2d = target.astype(jnp.int32).reshape(n, 1)
    if padded_n != n:
        pad = padded_n - n
        logits = jnp.pad(logits, ((0, pad), (0, 0)))
        # pad targets with -1 so they match no class
        target2d = jnp.pad(target2d, ((0, pad), (0, 0)), constant_values=-1)

    kernel = functools.partial(
        _dice_partial_kernel,
        tile_n=tile_n, n_classes=c, n_valid=n, padded_n=padded_n, alpha=alpha)

    part_shape = jax.ShapeDtypeStruct((num_tiles, 8, c), jnp.float32)
    part_spec = pl.BlockSpec((1, 8, c), lambda i: (i, 0, 0))

    ip_out, ps_out, ys_out = pl.pallas_call(
        kernel,
        out_shape=(part_shape, part_shape, part_shape),
        grid_spec=pltpu.PrefetchScalarGridSpec(
            num_scalar_prefetch=0,
            grid=(num_tiles,),
            in_specs=[
                pl.BlockSpec((tile_n, c), lambda i: (i, 0)),
                # keep the int32 targets as a (tile_n, 1) VMEM block (SMEM
                # would pad to [*, 128] words)
                pl.BlockSpec((tile_n, 1), lambda i: (i, 0)),
            ],
            out_specs=[part_spec, part_spec, part_spec],
        ),
        compiler_params=pltpu.CompilerParams(
            dimension_semantics=("parallel",)),
    )(logits, target2d)

    # Tiny scalar epilogue in plain JAX.
    # torch semantics:
    #   loss[i] = sum_c [ 1 - (2*p[i,c]*y[i,c] + smooth) / (S_p_c + S_y_c + smooth) ]
    #   final   = mean_i loss[i]
    #           = C - (1/N) * sum_c (2*I_c + N*smooth) / (S_p_c + S_y_c + smooth)
    ip_c = jnp.sum(ip_out, axis=(0, 1))            # (C,) intersection per class
    p_c = jnp.sum(ps_out, axis=(0, 1))             # (C,) sum of probs per class
    y_c = jnp.sum(ys_out, axis=(0, 1))             # (C,) sum of targets per class
    num = 2.0 * ip_c + jnp.float32(n) * jnp.float32(smooth)
    den = p_c + y_c + jnp.float32(smooth)
    return jnp.float32(c) - jnp.sum(num / den) / jnp.float32(n)


def dice_loss_ref(logits, target, *, smooth=0.0001, alpha=0.0):
    """Pure-JAX reference mirroring the PyTorch DiceLoss default forward."""
    n, c = logits.shape
    p = jax.nn.softmax(logits, axis=1)
    p = jnp.power(1.0 - p, alpha) * p
    y = jax.nn.one_hot(target, c, dtype=jnp.float32)
    loss = jnp.zeros((n,), jnp.float32)
    for label_idx in range(c):
        pi = p[:, label_idx]
        yi = y[:, label_idx]
        inter = pi * yi
        loss_c = 1.0 - (2.0 * inter + smooth) / (pi.sum() + yi.sum() + smooth)
        loss = loss + loss_c
    return loss.mean()


if __name__ == "__main__":
    # batch=2, seq=64 -> N = 128 token positions, C = 16 classes
    N, C = 128, 16
    key = jax.random.PRNGKey(0)
    k1, k2 = jax.random.split(key)
    logits = jax.random.normal(k1, (N, C), dtype=jnp.float32)
    target = jax.random.randint(k2, (N,), 0, C, dtype=jnp.int32)

    out = dice_loss_pallas(logits, target)
    out = jax.block_until_ready(out)

    ref = dice_loss_ref(logits, target)
    np.testing.assert_allclose(np.asarray(out), np.asarray(ref), atol=1e-5, rtol=1e-5)

    print("KERNEL_OK")
</pallas_src>

<mosaic_0001>
module attributes {stable_mosaic.version = 11 : i64} {
  func.func @_dice_partial_kernel(%arg0: i32, %arg1: memref<128x16xf32, #tpu.memory_space<vmem>>, %arg2: memref<128x1xi32, #tpu.memory_space<vmem>>, %arg3: memref<1x8x16xf32, #tpu.memory_space<vmem>>, %arg4: memref<1x8x16xf32, #tpu.memory_space<vmem>>, %arg5: memref<1x8x16xf32, #tpu.memory_space<vmem>>) attributes {dimension_semantics = [#tpu.dimension_semantics<parallel>], iteration_bounds = array<i64: 1>, scalar_prefetch = 0 : i64, scratch_operands = 0 : i64, tpu.core_type = #tpu.core_type<tc>, window_params = [{transform_indices = @transform_0, window_bounds = array<i64: 128, 16>}, {transform_indices = @transform_1, window_bounds = array<i64: 128, 1>}, {transform_indices = @transform_2, window_bounds = array<i64: 1, 8, 16>}, {transform_indices = @transform_3, window_bounds = array<i64: 1, 8, 16>}, {transform_indices = @transform_4, window_bounds = array<i64: 1, 8, 16>}]} {
    %c0 = arith.constant 0 : index
    %c0_0 = arith.constant 0 : index
    %0 = vector.load %arg1[%c0, %c0_0] : memref<128x16xf32, #tpu.memory_space<vmem>>, vector<128x16xf32>
    %cst = arith.constant dense<0xFF800000> : vector<128xf32>
    %1 = vector.multi_reduction <maximumf>, %0, %cst [1] : vector<128x16xf32> to vector<128xf32>
    %2 = vector.shape_cast %1 : vector<128xf32> to vector<128x1xf32>
    %3 = vector.broadcast %2 : vector<128x1xf32> to vector<128x16xf32>
    %4 = arith.subf %0, %3 : vector<128x16xf32>
    %5 = math.exp %4 : vector<128x16xf32>
    %cst_1 = arith.constant dense<0.000000e+00> : vector<128xf32>
    %6 = vector.multi_reduction <add>, %5, %cst_1 [1] : vector<128x16xf32> to vector<128xf32>
    %7 = vector.shape_cast %6 : vector<128xf32> to vector<128x1xf32>
    %8 = tpu.reciprocal %7 : vector<128x1xf32> -> vector<128x1xf32>
    %9 = vector.broadcast %8 : vector<128x1xf32> to vector<128x16xf32>
    %10 = arith.mulf %5, %9 : vector<128x16xf32>
    %11 = tpu.iota {dimensions = array<i32: 1>} : vector<128x16xi32>
    %c0_2 = arith.constant 0 : index
    %c0_3 = arith.constant 0 : index
    %12 = vector.load %arg2[%c0_2, %c0_3] : memref<128x1xi32, #tpu.memory_space<vmem>>, vector<128x1xi32>
    %13 = vector.broadcast %12 : vector<128x1xi32> to vector<128x16xi32>
    %14 = arith.cmpi eq, %13, %11 : vector<128x16xi32>
    %15 = arith.extui %14 : vector<128x16xi1> to vector<128x16xi32>
    %16 = arith.sitofp %15 : vector<128x16xi32> to vector<128x16xf32>
    %cst_4 = arith.constant 0.000000e+00 : f32
    %17 = vector.broadcast %cst_4 : f32 to vector<128x16xf32>
    %18 = arith.select %14, %10, %17 : vector<128x16xi1>, vector<128x16xf32>
    %19 = vector.extract_strided_slice %18 {offsets = [0, 0], sizes = [64, 16], strides = [1, 1]} : vector<128x16xf32> to vector<64x16xf32>
    %20 = vector.extract_strided_slice %18 {offsets = [64, 0], sizes = [64, 16], strides = [1, 1]} : vector<128x16xf32> to vector<64x16xf32>
    %21 = arith.addf %19, %20 : vector<64x16xf32>
    %22 = vector.extract_strided_slice %21 {offsets = [0, 0], sizes = [32, 16], strides = [1, 1]} : vector<64x16xf32> to vector<32x16xf32>
    %23 = vector.extract_strided_slice %21 {offsets = [32, 0], sizes = [32, 16], strides = [1, 1]} : vector<64x16xf32> to vector<32x16xf32>
    %24 = arith.addf %22, %23 : vector<32x16xf32>
    %25 = vector.extract_strided_slice %24 {offsets = [0, 0], sizes = [16, 16], strides = [1, 1]} : vector<32x16xf32> to vector<16x16xf32>
    %26 = vector.extract_strided_slice %24 {offsets = [16, 0], sizes = [16, 16], strides = [1, 1]} : vector<32x16xf32> to vector<16x16xf32>
    %27 = arith.addf %25, %26 : vector<16x16xf32>
    %28 = vector.extract_strided_slice %27 {offsets = [0, 0], sizes = [8, 16], strides = [1, 1]} : vector<16x16xf32> to vector<8x16xf32>
    %29 = vector.extract_strided_slice %27 {offsets = [8, 0], sizes = [8, 16], strides = [1, 1]} : vector<16x16xf32> to vector<8x16xf32>
    %30 = arith.addf %28, %29 : vector<8x16xf32>
    %c0_5 = arith.constant 0 : index
    %c0_6 = arith.constant 0 : index
    %c0_7 = arith.constant 0 : index
    %31 = vector.load %arg3[%c0_5, %c0_6, %c0_7] : memref<1x8x16xf32, #tpu.memory_space<vmem>>, vector<1x8x16xf32>
    %32 = vector.shape_cast %31 : vector<1x8x16xf32> to vector<8x16xf32>
    %33 = vector.shape_cast %30 : vector<8x16xf32> to vector<1x8x16xf32>
    tpu.vector_store %arg3[%c0_5, %c0_6, %c0_7], %33 {strides = array<i32>} : memref<1x8x16xf32, #tpu.memory_space<vmem>>, vector<1x8x16xf32>,
    %34 = vector.extract_strided_slice %10 {offsets = [0, 0], sizes = [64, 16], strides = [1, 1]} : vector<128x16xf32> to vector<64x16xf32>
    %35 = vector.extract_strided_slice %10 {offsets = [64, 0], sizes = [64, 16], strides = [1, 1]} : vector<128x16xf32> to vector<64x16xf32>
    %36 = arith.addf %34, %35 : vector<64x16xf32>
    %37 = vector.extract_strided_slice %36 {offsets = [0, 0], sizes = [32, 16], strides = [1, 1]} : vector<64x16xf32> to vector<32x16xf32>
    %38 = vector.extract_strided_slice %36 {offsets = [32, 0], sizes = [32, 16], strides = [1, 1]} : vector<64x16xf32> to vector<32x16xf32>
    %39 = arith.addf %37, %38 : vector<32x16xf32>
    %40 = vector.extract_strided_slice %39 {offsets = [0, 0], sizes = [16, 16], strides = [1, 1]} : vector<32x16xf32> to vector<16x16xf32>
    %41 = vector.extract_strided_slice %39 {offsets = [16, 0], sizes = [16, 16], strides = [1, 1]} : vector<32x16xf32> to vector<16x16xf32>
    %42 = arith.addf %40, %41 : vector<16x16xf32>
    %43 = vector.extract_strided_slice %42 {offsets = [0, 0], sizes = [8, 16], strides = [1, 1]} : vector<16x16xf32> to vector<8x16xf32>
    %44 = vector.extract_strided_slice %42 {offsets = [8, 0], sizes = [8, 16], strides = [1, 1]} : vector<16x16xf32> to vector<8x16xf32>
    %45 = arith.addf %43, %44 : vector<8x16xf32>
    %c0_8 = arith.constant 0 : index
    %c0_9 = arith.constant 0 : index
    %c0_10 = arith.constant 0 : index
    %46 = vector.load %arg4[%c0_8, %c0_9, %c0_10] : memref<1x8x16xf32, #tpu.memory_space<vmem>>, vector<1x8x16xf32>
    %47 = vector.shape_cast %46 : vector<1x8x16xf32> to vector<8x16xf32>
    %48 = vector.shape_cast %45 : vector<8x16xf32> to vector<1x8x16xf32>
    tpu.vector_store %arg4[%c0_8, %c0_9, %c0_10], %48 {strides = array<i32>} : memref<1x8x16xf32, #tpu.memory_space<vmem>>, vector<1x8x16xf32>,
    %49 = vector.extract_strided_slice %16 {offsets = [0, 0], sizes = [64, 16], strides = [1, 1]} : vector<128x16xf32> to vector<64x16xf32>
    %50 = vector.extract_strided_slice %16 {offsets = [64, 0], sizes = [64, 16], strides = [1, 1]} : vector<128x16xf32> to vector<64x16xf32>
    %51 = arith.addf %49, %50 : vector<64x16xf32>
    %52 = vector.extract_strided_slice %51 {offsets = [0, 0], sizes = [32, 16], strides = [1, 1]} : vector<64x16xf32> to vector<32x16xf32>
    %53 = vector.extract_strided_slice %51 {offsets = [32, 0], sizes = [32, 16], strides = [1, 1]} : vector<64x16xf32> to vector<32x16xf32>
    %54 = arith.addf %52, %53 : vector<32x16xf32>
    %55 = vector.extract_strided_slice %54 {offsets = [0, 0], sizes = [16, 16], strides = [1, 1]} : vector<32x16xf32> to vector<16x16xf32>
    %56 = vector.extract_strided_slice %54 {offsets = [16, 0], sizes = [16, 16], strides = [1, 1]} : vector<32x16xf32> to vector<16x16xf32>
    %57 = arith.addf %55, %56 : vector<16x16xf32>
    %58 = vector.extract_strided_slice %57 {offsets = [0, 0], sizes = [8, 16], strides = [1, 1]} : vector<16x16xf32> to vector<8x16xf32>
    %59 = vector.extract_strided_slice %57 {offsets = [8, 0], sizes = [8, 16], strides = [1, 1]} : vector<16x16xf32> to vector<8x16xf32>
    %60 = arith.addf %58, %59 : vector<8x16xf32>
    %c0_11 = arith.constant 0 : index
    %c0_12 = arith.constant 0 : index
    %c0_13 = arith.constant 0 : index
    %61 = vector.load %arg5[%c0_11, %c0_12, %c0_13] : memref<1x8x16xf32, #tpu.memory_space<vmem>>, vector<1x8x16xf32>
    %62 = vector.shape_cast %61 : vector<1x8x16xf32> to vector<8x16xf32>
    %63 = vector.shape_cast %60 : vector<8x16xf32> to vector<1x8x16xf32>
    tpu.vector_store %arg5[%c0_11, %c0_12, %c0_13], %63 {strides = array<i32>} : memref<1x8x16xf32, #tpu.memory_space<vmem>>, vector<1x8x16xf32>,
    return
  }
  func.func @transform_0(%arg0: i32) -> (i32, i32) {
    %c0_i32 = arith.constant 0 : i32
    %c0_i32_0 = arith.constant 0 : i32
    return %arg0, %c0_i32 : i32, i32
  }
  func.func @transform_1(%arg0: i32) -> (i32, i32) {
    %c0_i32 = arith.constant 0 : i32
    %c0_i32_0 = arith.constant 0 : i32
    return %arg0, %c0_i32 : i32, i32
  }
  func.func @transform_2(%arg0: i32) -> (i32, i32, i32) {
    %c0_i32 = arith.constant 0 : i32
    %c0_i32_0 = arith.constant 0 : i32
    %c0_i32_1 = arith.constant 0 : i32
    return %arg0, %c0_i32, %c0_i32_0 : i32, i32, i32
  }
  func.func @transform_3(%arg0: i32) -> (i32, i32, i32) {
    %c0_i32 = arith.constant 0 : i32
    %c0_i32_0 = arith.constant 0 : i32
    %c0_i32_1 = arith.constant 0 : i32
    return %arg0, %c0_i32, %c0_i32_0 : i32, i32, i32
  }
  func.func @transform_4(%arg0: i32) -> (i32, i32, i32) {
    %c0_i32 = arith.constant 0 : i32
    %c0_i32_0 = arith.constant 0 : i32
    %c0_i32_1 = arith.constant 0 : i32
    return %arg0, %c0_i32, %c0_i32_0 : i32, i32, i32
  }
}

</mosaic_0001>

<bundles_post_ra>
// kernel: tpu_custom_call.1
= control target key start
LH: loop header
LB: loop body
LE: loop exit
PB: predicated region body
PF: predicated region fallthrough
CT: control target
= control target key end

     0   :  { %10 = vsyncpa [#allocation3], 0  ;;  %vm1050_vm0 = vcmask 130048   ;;  %v579_v6 = vmov 0   ;;  %s1045_s0 = inlined_call_operand.vmem [shape: f32[128,16], index: 0, kind: input, shape index: {}]   ;;  %s1046_s1 = inlined_call_operand.vmem [shape: s32[128,1], index: 1, kind: input, shape index: {}]   ;;  %s1047_s2 = inlined_call_operand.hbm [shape: f32[1,8,16], index: 2, kind: output, shape index: {0}]   ;;  %s1048_s3 = inlined_call_operand.hbm [shape: f32[1,8,16], index: 3, kind: output, shape index: {1}]   ;;  %s1049_s4 = inlined_call_operand.hbm [shape: f32[1,8,16], index: 4, kind: output, shape index: {2}]  }
   0x1   :  { %v612_v0 = vld [vmem:[%s1045_s0] sm:$0xff]  ;;  %v617_v1 = vld [vmem:[%s1045_s0 + $0x10] sm:$0xff]  ;;  %v622_v2 = vld [vmem:[%s1045_s0 + $0x8] sm:$0xff]  ;;  %450 = vset.pattern.permute.xlu1 %v579_v6  ;;  %449 = vset.pattern.permute.xlu0 %v579_v6 }
   0x2   :  { %v33_v3 = vsel %vm1050_vm0, %v612_v0, -inf  ;;  %v39_v4 = vsel %vm1050_vm0, %v617_v1, -inf  ;;  %v631_v5 = vld [vmem:[%s1045_s0 + $0x18] sm:$0xff]  ;;  %v36_v7 = vsel %vm1050_vm0, %v622_v2, -inf  ;;  %v640_v9 = vld [vmem:[%s1045_s0 + $0x20] sm:$0xff]  ;;  %v645_v10 = vld [vmem:[%s1045_s0 + $0x28] sm:$0xff] }
   0x3   :  { %34 = vmax.xlane.f32.xlu0 %v33_v3  ;;  %40 = vmax.xlane.f32.xlu1 %v39_v4  ;;  %v42_v8 = vsel %vm1050_vm0, %v631_v5, -inf  ;;  %v45_v11 = vsel %vm1050_vm0, %v640_v9, -inf  ;;  %v48_v12 = vsel %vm1050_vm0, %v645_v10, -inf  ;;  %v654_v13 = vld [vmem:[%s1045_s0 + $0x30] sm:$0xff]  ;;  %v659_v14 = vld [vmem:[%s1045_s0 + $0x38] sm:$0xff] }
   0x7   :  { %37 = vmax.xlane.f32.xlu0 %v36_v7  ;;  %43 = vmax.xlane.f32.xlu1 %v42_v8 }
   0xb   :  { %46 = vmax.xlane.f32.xlu0 %v45_v11  ;;  %49 = vmax.xlane.f32.xlu1 %v48_v12 }
   0xc   :  { %11 = vsyncpa [#allocation5], 0  ;;  %v51_v15 = vsel %vm1050_vm0, %v654_v13, -inf  ;;  %v54_v16 = vsel %vm1050_vm0, %v659_v14, -inf  ;;  %v668_v17 = vld [vmem:[%s1045_s0 + $0x40] sm:$0xff]  ;;  %v673_v18 = vld [vmem:[%s1045_s0 + $0x48] sm:$0xff] }
   0xd   :  { %v57_v19 = vsel %vm1050_vm0, %v668_v17, -inf  ;;  %v60_v20 = vsel %vm1050_vm0, %v673_v18, -inf  ;;  %v682_v21 = vld [vmem:[%s1045_s0 + $0x50] sm:$0xff]  ;;  %v687_v22 = vld [vmem:[%s1045_s0 + $0x58] sm:$0xff]  ;;  %v696_v25 = vld [vmem:[%s1045_s0 + $0x60] sm:$0xff]  ;;  %s582_s26 = smov [#allocation2]  }
   0xe   :  { %v63_v23 = vsel %vm1050_vm0, %v682_v21, -inf  ;;  %v66_v24 = vsel %vm1050_vm0, %v687_v22, -inf  ;;  %v701_v26 = vld [vmem:[%s1045_s0 + $0x68] sm:$0xff]  ;;  %v69_v27 = vsel %vm1050_vm0, %v696_v25, -inf  ;;  %v710_v29 = vld [vmem:[%s1045_s0 + $0x70] sm:$0xff]  ;;  %v715_v30 = vld [vmem:[%s1045_s0 + $0x78] sm:$0xff] }
   0xf   :  { %52 = vmax.xlane.f32.xlu0 %v51_v15  ;;  %55 = vmax.xlane.f32.xlu1 %v54_v16  ;;  %v72_v28 = vsel %vm1050_vm0, %v701_v26, -inf  ;;  %v75_v31 = vsel %vm1050_vm0, %v710_v29, -inf  ;;  %v78_v32 = vsel %vm1050_vm0, %v715_v30, -inf  ;;  %v212_v33 = vld [vmem:[%s1046_s1 + $0x8] sm:$0xff]  ;;  %v213_v34 = vld [vmem:[%s1046_s1 + $0x10] sm:$0xff]  ;;  %v211_v35 = vld [vmem:[%s1046_s1] sm:$0xff] }
  0x10   :  { %v214_v36 = vld [vmem:[%s1046_s1 + $0x18] sm:$0xff]  ;;  %v220_v37 = vld [vmem:[%s1046_s1 + $0x48] sm:$0xff]  ;;  %v215_v38 = vld [vmem:[%s1046_s1 + $0x20] sm:$0xff]  ;;  %s393_s27 = sshll.u32 %s582_s26, 4  ;;  %s583_s28 = smov [#allocation6]   ;;  %s394_s27 = int_to_ptr.vmem [resolvable:$true] %s393_s27 }
  0x11   :  { %v222_v39 = vld [vmem:[%s1046_s1 + $0x58] sm:$0xff]  ;;  %v216_v40 = vld [vmem:[%s1046_s1 + $0x28] sm:$0xff]  ;;  %v217_v42 = vld [vmem:[%s1046_s1 + $0x30] sm:$0xff]  ;;  %s413_s29 = sshll.u32 %s583_s28, 4  ;;  %s414_s29 = int_to_ptr.vmem [resolvable:$true] %s413_s29 }
  0x12   :  { %v224_v41 = vld [vmem:[%s1046_s1 + $0x68] sm:$0xff]  ;;  %v218_v43 = vld [vmem:[%s1046_s1 + $0x38] sm:$0xff]  ;;  %v219_v44 = vld [vmem:[%s1046_s1 + $0x40] sm:$0xff] }
  0x13   :  { %58 = vmax.xlane.f32.xlu0 %v57_v19  ;;  %61 = vmax.xlane.f32.xlu1 %v60_v20  ;;  %v221_v45 = vld [vmem:[%s1046_s1 + $0x50] sm:$0xff]  ;;  %v223_v46 = vld [vmem:[%s1046_s1 + $0x60] sm:$0xff] }
  0x17   :  { %64 = vmax.xlane.f32.xlu0 %v63_v23  ;;  %67 = vmax.xlane.f32.xlu1 %v66_v24 }
  0x1b   :  { %70 = vmax.xlane.f32.xlu0 %v69_v27  ;;  %73 = vmax.xlane.f32.xlu1 %v72_v28 }
  0x1f   :  { %76 = vmax.xlane.f32.xlu0 %v75_v31  ;;  %79 = vmax.xlane.f32.xlu1 %v78_v32 }
  0x30   :  { %231 = vperm.xlu1 %450, %v212_v33  }
  0x34   :  { %234 = vperm.xlu1 %450, %v213_v34  }
  0x35   :  { %228 = vperm.xlu0 %449, %v211_v35  }
  0x38   :  { %237 = vperm.xlu1 %450, %v214_v36  }
  0x39   :  { %255 = vperm.xlu0 %449, %v220_v37  }
  0x3c   :  { %240 = vperm.xlu1 %450, %v215_v38  }
  0x3d   :  { %261 = vperm.xlu0 %449, %v222_v39  }
  0x40   :  { %243 = vperm.xlu1 %450, %v216_v40  }
  0x41   :  { %267 = vperm.xlu0 %449, %v224_v41  }
  0x44   :  { %246 = vperm.xlu1 %450, %v217_v42  }
  0x48   :  { %249 = vperm.xlu1 %450, %v218_v43  }
  0x4c   :  { %252 = vperm.xlu1 %450, %v219_v44  }
  0x50   :  { %258 = vperm.xlu1 %450, %v221_v45  }
  0x54   :  { %264 = vperm.xlu1 %450, %v223_v46  }
  0x8c   :  { %v35_v47 = vpop.xlane.xlu0 %34  ;;  %v41_v48 = vpop.xlane.xlu1 %40 }
  0x8d   :  { %v81_v49 = vsub.f32 %v612_v0, %v35_v47  ;;  %v83_v50 = vsub.f32 %v617_v1, %v41_v48 }
  0x8f   :  { %v97_v51 = vmul.f32 1.442695, %v81_v49  ;;  %v101_v52 = vmul.f32 1.442695, %v83_v50 }
  0x90   :  { %v38_v53 = vpop.xlane.xlu0 %37  ;;  %v44_v54 = vpop.xlane.xlu1 %43 }
  0x91   :  { %451 = vpow2.f32 %v97_v51  ;;  %v82_v55 = vsub.f32 %v622_v2, %v38_v53  ;;  %v84_v56 = vsub.f32 %v631_v5, %v44_v54 }
  0x92   :  { %453 = vpow2.f32 %v101_v52 }
  0x93   :  { %v99_v57 = vmul.f32 1.442695, %v82_v55  ;;  %v103_v58 = vmul.f32 1.442695, %v84_v56 }
  0x94   :  { %v47_v59 = vpop.xlane.xlu0 %46  ;;  %v50_v60 = vpop.xlane.xlu1 %49 }
  0x95   :  { %455 = vpow2.f32 %v99_v57  ;;  %v85_v61 = vsub.f32 %v640_v9, %v47_v59  ;;  %v86_v62 = vsub.f32 %v645_v10, %v50_v60 }
  0x96   :  { %457 = vpow2.f32 %v103_v58 }
  0x97   :  { %v105_v63 = vmul.f32 1.442695, %v85_v61  ;;  %v107_v0 = vmul.f32 1.442695, %v86_v62 }
  0x98   :  { %v53_v1 = vpop.xlane.xlu0 %52  ;;  %v56_v3 = vpop.xlane.xlu1 %55 }
  0x99   :  { %459 = vpow2.f32 %v105_v63  ;;  %v87_v2 = vsub.f32 %v654_v13, %v53_v1  ;;  %v88_v4 = vsub.f32 %v659_v14, %v56_v3  ;;  %v225_v63 = vld [vmem:[%s1046_s1 + $0x70] sm:$0xff] }
  0x9a   :  { %461 = vpow2.f32 %v107_v0  ;;  %v226_v0 = vld [vmem:[%s1046_s1 + $0x78] sm:$0xff]  ;;  %s581_s1 = smov [#allocation4]  }
  0x9b   :  { %v109_v5 = vmul.f32 1.442695, %v87_v2  ;;  %v111_v6 = vmul.f32 1.442695, %v88_v4  ;;  %s403_s25 = sshll.u32 %s581_s1, 4  ;;  %s404_s25 = int_to_ptr.vmem [resolvable:$true] %s403_s25 }
  0x9c   :  { %v59_v7 = vpop.xlane.xlu0 %58  ;;  %v62_v8 = vpop.xlane.xlu1 %61  ;;  %s515_s30 = scalar_lea.vmem %s404_s25, 128  ;;  %p520_p1 = scmp.lt.s32.totalorder %s404_s25, %s404_s25 }
  0x9d   :  { %463 = vpow2.f32 %v109_v5  ;;  %v89_v9 = vsub.f32 %v668_v17, %v59_v7  ;;  %v90_v10 = vsub.f32 %v673_v18, %v62_v8  ;;  %p516_p0 = scmp.ne.s32.totalorder %s404_s25, %s515_s30  ;;  %p521_p2 = scmp.lt.s32.totalorder %s515_s30, %s515_s30 }
  0x9e   :  { %v773_v11 = vpop.eup %451  ;;  %465 = vpow2.f32 %v111_v6 }
  0x9f   :  { %v775_v12 = vpop.eup %453  ;;  %v113_v15 = vmul.f32 1.442695, %v89_v9  ;;  %v115_v16 = vmul.f32 1.442695, %v90_v10  ;;  %v129_v13 = vsel %vm1050_vm0, %v773_v11, 0.0  ;;  %p522_p3 = por %p521_p2, %p520_p1 }
  0xa0   :  { %130 = vadd.xlane.f32.xlu0 %v129_v13  ;;  %v65_v14 = vpop.xlane.xlu0 %64  ;;  %v68_v19 = vpop.xlane.xlu1 %67  ;;  %v135_v18 = vsel %vm1050_vm0, %v775_v12, 0.0 }
  0xa1   :  { %467 = vpow2.f32 %v113_v15  ;;  %v91_v20 = vsub.f32 %v682_v21, %v65_v14  ;;  %v92_v17 = vsub.f32 %v687_v22, %v68_v19  ;;  %p523_p4 = pnand %p522_p3, %p516_p0 }
  0xa2   :  { %v783_v23 = vpop.eup %455  ;;  %469 = vpow2.f32 %v115_v16 }
  0xa3   :  { %v785_v24 = vpop.eup %457  ;;  %v117_v27 = vmul.f32 1.442695, %v91_v20  ;;  %v119_v28 = vmul.f32 1.442695, %v92_v17  ;;  %v132_v31 = vsel %vm1050_vm0, %v783_v23, 0.0 }
  0xa4   :  { %136 = vadd.xlane.f32.xlu0 %v135_v18  ;;  %133 = vadd.xlane.f32.xlu1 %v132_v31  ;;  %v71_v32 = vpop.xlane.xlu0 %70  ;;  %v74_v33 = vpop.xlane.xlu1 %73  ;;  %v138_v34 = vsel %vm1050_vm0, %v785_v24, 0.0 }
  0xa5   :  { %471 = vpow2.f32 %v117_v27  ;;  %v93_v21 = vsub.f32 %v696_v25, %v71_v32  ;;  %v94_v22 = vsub.f32 %v701_v26, %v74_v33  ;;  %v209_v32 = vlaneseq }
  0xa6   :  { %v793_v35 = vpop.eup %459  ;;  %473 = vpow2.f32 %v119_v28 }
  0xa7   :  { %v795_v36 = vpop.eup %461  ;;  %v121_v37 = vmul.f32 1.442695, %v93_v21  ;;  %v123_v38 = vmul.f32 1.442695, %v94_v22  ;;  %v141_v39 = vsel %vm1050_vm0, %v793_v35, 0.0  ;;  %v877_v22 = vand.u32 127, %v209_v32 }
  0xa8   :  { %139 = vadd.xlane.f32.xlu1 %v138_v34  ;;  %142 = vadd.xlane.f32.xlu0 %v141_v39  ;;  %v77_v40 = vpop.xlane.xlu0 %76  ;;  %v80_v41 = vpop.xlane.xlu1 %79  ;;  %v144_v42 = vsel %vm1050_vm0, %v795_v36, 0.0 }
  0xa9   :  { %475 = vpow2.f32 %v121_v37  ;;  %v95_v25 = vsub.f32 %v710_v29, %v77_v40  ;;  %v96_v26 = vsub.f32 %v715_v30, %v80_v41  ;;  %v580_v40 = vmov 0.0  }
  0xaa   :  { %v803_v43 = vpop.eup %463  ;;  %477 = vpow2.f32 %v123_v38 }
  0xab   :  { %v805_v44 = vpop.eup %465  ;;  %v125_v45 = vmul.f32 1.442695, %v95_v25  ;;  %v127_v46 = vmul.f32 1.442695, %v96_v26  ;;  %v147_v47 = vsel %vm1050_vm0, %v803_v43, 0.0 }
  0xac   :  { %145 = vadd.xlane.f32.xlu1 %v144_v42  ;;  %148 = vadd.xlane.f32.xlu0 %v147_v47  ;;  %v150_v29 = vsel %vm1050_vm0, %v805_v44, 0.0  ;;  %v849_v1 = vpop.permute.xlu1 %231 }
  0xad   :  { %479 = vpow2.f32 %v125_v45  ;;  %vm276_vm1 = vcmp.eq.s32.totalorder %v849_v1, %v877_v22 }
  0xae   :  { %v811_v30 = vpop.eup %467  ;;  %481 = vpow2.f32 %v127_v46  ;;  %v429_v41 = vsel %vm276_vm1, 1.0, %v580_v40 }
  0xaf   :  { %v813_v48 = vpop.eup %469  ;;  %v153_v49 = vsel %vm1050_vm0, %v811_v30, 0.0 }
  0xb0   :  { %151 = vadd.xlane.f32.xlu1 %v150_v29  ;;  %154 = vadd.xlane.f32.xlu0 %v153_v49  ;;  %v156_v50 = vsel %vm1050_vm0, %v813_v48, 0.0  ;;  %v851_v3 = vpop.permute.xlu1 %234  ;;  %v861_v7 = vpop.permute.xlu0 %228 }
  0xb1   :  { %vm275_vm6 = vcmp.eq.s32.totalorder %v861_v7, %v877_v22  ;;  %vm277_vm9 = vcmp.eq.s32.totalorder %v851_v3, %v877_v22 }
  0xb2   :  { %v819_v51 = vpop.eup %471  ;;  %v428_v29 = vsel %vm275_vm6, 1.0, %v580_v40 }
  0xb3   :  { %v821_v52 = vpop.eup %473  ;;  %v159_v53 = vsel %vm1050_vm0, %v819_v51, 0.0 }
  0xb4   :  { %157 = vadd.xlane.f32.xlu1 %v156_v50  ;;  %160 = vadd.xlane.f32.xlu0 %v159_v53  ;;  %v162_v54 = vsel %vm1050_vm0, %v821_v52, 0.0  ;;  %v853_v2 = vpop.permute.xlu1 %237  ;;  %v865_v9 = vpop.permute.xlu0 %255 }
  0xb5   :  { %vm284_vm3 = vcmp.eq.s32.totalorder %v865_v9, %v877_v22  ;;  %vm278_vm10 = vcmp.eq.s32.totalorder %v853_v2, %v877_v22 }
  0xb6   :  { %v827_v55 = vpop.eup %475  ;;  %v437_v42 = vsel %vm284_vm3, 1.0, %v580_v40 }
  0xb7   :  { %v829_v56 = vpop.eup %477  ;;  %v165_v57 = vsel %vm1050_vm0, %v827_v55, 0.0 }
  0xb8   :  { %163 = vadd.xlane.f32.xlu1 %v162_v54  ;;  %166 = vadd.xlane.f32.xlu0 %v165_v57  ;;  %v168_v58 = vsel %vm1050_vm0, %v829_v56, 0.0  ;;  %v855_v4 = vpop.permute.xlu1 %240  ;;  %v869_v15 = vpop.permute.xlu0 %261 }
  0xb9   :  { %vm279_vm5 = vcmp.eq.s32.totalorder %v855_v4, %v877_v22  ;;  %vm286_vm11 = vcmp.eq.s32.totalorder %v869_v15, %v877_v22 }
  0xba   :  { %v835_v59 = vpop.eup %479  ;;  %v432_v47 = vsel %vm279_vm5, 1.0, %v580_v40 }
  0xbb   :  { %v837_v60 = vpop.eup %481  ;;  %v171_v61 = vsel %vm1050_vm0, %v835_v59, 0.0 }
  0xbc   :  { %169 = vadd.xlane.f32.xlu1 %v168_v58  ;;  %172 = vadd.xlane.f32.xlu0 %v171_v61  ;;  %v174_v62 = vsel %vm1050_vm0, %v837_v60, 0.0  ;;  %v857_v5 = vpop.permute.xlu1 %243  ;;  %v873_v13 = vpop.permute.xlu0 %267  ;;  %v372_v61 = vadd.f32 %v437_v42, %v429_v41 }
  0xbd   :  { %vm280_vm2 = vcmp.eq.s32.totalorder %v857_v5, %v877_v22  ;;  %vm288_vm4 = vcmp.eq.s32.totalorder %v873_v13, %v877_v22 }
  0xbe   :  { %v433_v26 = vsel %vm280_vm2, 1.0, %v580_v40  ;;  %v441_v45 = vsel %vm288_vm4, 1.0, %v580_v40 }
  0xc0   :  { %175 = vadd.xlane.f32.xlu1 %v174_v62  ;;  %v859_v6 = vpop.permute.xlu1 %246  ;;  %v376_v62 = vadd.f32 %v441_v45, %v433_v26 }
  0xc1   :  { %vm281_vm13 = vcmp.eq.s32.totalorder %v859_v6, %v877_v22 }
  0xc4   :  { %v863_v8 = vpop.permute.xlu1 %249 }
  0xc5   :  { %vm282_vm14 = vcmp.eq.s32.totalorder %v863_v8, %v877_v22 }
  0xc6   :  { %v435_v41 = vsel %vm282_vm14, 1.0, %v580_v40 }
  0xc8   :  { %v867_v10 = vpop.permute.xlu1 %252 }
  0xc9   :  { %vm283_vm7 = vcmp.eq.s32.totalorder %v867_v10, %v877_v22 }
  0xca   :  { %v436_v54 = vsel %vm283_vm7, 1.0, %v580_v40 }
  0xcc   :  { %v871_v16 = vpop.permute.xlu1 %258 }
  0xcd   :  { %vm285_vm12 = vcmp.eq.s32.totalorder %v871_v16, %v877_v22 }
  0xd0   :  { %v875_v14 = vpop.permute.xlu1 %264 }
  0xd1   :  { %270 = vperm.xlu1 %450, %v225_v63   ;;  %vm287_vm8 = vcmp.eq.s32.totalorder %v875_v14, %v877_v22 }
  0xd2   :  { %273 = vperm.xlu0 %449, %v226_v0   ;;  %v440_v57 = vsel %vm287_vm8, 1.0, %v580_v40  ;;  %v430_v0 = vsel %vm277_vm9, 1.0, %v580_v40 }
 0x129   :  { %v131_v19 = vpop.xlane.xlu0 %130 }
 0x12a   :  { %483 = vrcp.f32 %v131_v19  ;;  %v431_v19 = vsel %vm278_vm10, 1.0, %v580_v40 }
 0x12d   :  { %v134_v20 = vpop.xlane.xlu1 %133  ;;  %v137_v17 = vpop.xlane.xlu0 %136 }
 0x12e   :  { %485 = vrcp.f32 %v134_v20  ;;  %v439_v20 = vsel %vm286_vm11, 1.0, %v580_v40 }
 0x12f   :  { %487 = vrcp.f32 %v137_v17 }
 0x131   :  { %v140_v18 = vpop.xlane.xlu1 %139  ;;  %v143_v27 = vpop.xlane.xlu0 %142 }
 0x132   :  { %489 = vrcp.f32 %v140_v18  ;;  %v371_v18 = vadd.f32 %v436_v54, %v428_v29 }
 0x133   :  { %491 = vrcp.f32 %v143_v27  ;;  %v438_v27 = vsel %vm285_vm12, 1.0, %v580_v40 }
 0x134   :  { %v373_v26 = vadd.f32 %v438_v27, %v430_v0 }
 0x135   :  { %v146_v28 = vpop.xlane.xlu1 %145  ;;  %v149_v31 = vpop.xlane.xlu0 %148 }
 0x136   :  { %493 = vrcp.f32 %v146_v28  ;;  %v375_v28 = vadd.f32 %v440_v57, %v432_v47 }
 0x137   :  { %v484_v25 = vpop.eup %483 }
 0x138   :  { %v379_v47 = vadd.f32 %v375_v28, %v371_v18 }
 0x139   :  { %v152_v33 = vpop.xlane.xlu1 %151  ;;  %v155_v21 = vpop.xlane.xlu0 %154 }
 0x13a   :  { %495 = vrcp.f32 %v155_v21 }
 0x13b   :  { %497 = vrcp.f32 %v149_v31  ;;  %v486_v46 = vpop.eup %485 }
 0x13c   :  { %499 = vrcp.f32 %v152_v33  ;;  %v488_v53 = vpop.eup %487  ;;  %v193_v33 = vmul.f32 %v484_v25, %v773_v11  ;;  %v194_v42 = vmul.f32 %v486_v46, %v783_v23 }
 0x13d   :  { %v158_v34 = vpop.xlane.xlu1 %157  ;;  %v161_v37 = vpop.xlane.xlu0 %160  ;;  %v195_v25 = vmul.f32 %v488_v53, %v775_v12 }
 0x13e   :  { %501 = vrcp.f32 %v158_v34  ;;  %v374_v34 = vadd.f32 %v439_v20, %v431_v19  ;;  %v323_v23 = vsel %vm275_vm6, %v193_v33, 0.0  ;;  %v324_v7 = vsel %vm276_vm1, %v194_v42, 0.0 }
 0x13f   :  { %503 = vrcp.f32 %v161_v37  ;;  %v490_v58 = vpop.eup %489  ;;  %v380_v37 = vadd.f32 %v376_v62, %v372_v61  ;;  %vm1051_vm1 = vcmask 130048  }
 0x140   :  { %v492_v63 = vpop.eup %491  ;;  %v196_v29 = vmul.f32 %v490_v58, %v785_v24 }
 0x141   :  { %v164_v38 = vpop.xlane.xlu1 %163  ;;  %v167_v39 = vpop.xlane.xlu0 %166  ;;  %v197_v57 = vmul.f32 %v492_v63, %v793_v35 }
 0x142   :  { %505 = vrcp.f32 %v164_v38  ;;  %v326_v63 = vsel %vm278_vm10, %v196_v29, 0.0 }
 0x143   :  { %507 = vrcp.f32 %v167_v39  ;;  %v494_v17 = vpop.eup %493  ;;  %v434_v39 = vsel %vm281_vm13, 1.0, %v580_v40 }
 0x145   :  { %v170_v49 = vpop.xlane.xlu1 %169  ;;  %v173_v50 = vpop.xlane.xlu0 %172 }
 0x146   :  { %509 = vrcp.f32 %v170_v49 }
 0x147   :  { %511 = vrcp.f32 %v173_v50  ;;  %v496_v32 = vpop.eup %495 }
 0x148   :  { %v498_v21 = vpop.eup %497  ;;  %v201_v50 = vmul.f32 %v496_v32, %v811_v30  ;;  %v198_v30 = vmul.f32 %v494_v17, %v795_v36 }
 0x149   :  { %v176_v31 = vpop.xlane.xlu1 %175  ;;  %v500_v38 = vpop.eup %499  ;;  %v199_v61 = vmul.f32 %v498_v21, %v803_v43  ;;  %v325_v43 = vsel %vm277_vm9, %v195_v25, 0.0 }
 0x14a   :  { %513 = vrcp.f32 %v176_v31  ;;  %v200_v35 = vmul.f32 %v500_v38, %v805_v44  ;;  %v331_v36 = vsel %vm283_vm7, %v201_v50, 0.0  ;;  %v328_v10 = vsel %vm280_vm2, %v198_v30, 0.0 }
 0x14b   :  { %v502_v45 = vpop.eup %501  ;;  %v329_v3 = vsel %vm281_vm13, %v199_v61, 0.0  ;;  %v339_v28 = vadd.f32 %v331_v36, %v323_v23 }
 0x14c   :  { %v504_v54 = vpop.eup %503 }
 0x14d   :  { %v271_v11 = vpop.permute.xlu1 %270  ;;  %v274_v49 = vpop.permute.xlu0 %273  ;;  %v203_v44 = vmul.f32 %v504_v54, %v819_v51 }
 0x14e   :  { %vm289_vm15 = vcmp.eq.s32.totalorder %v271_v11, %v877_v22  ;;  %vm290_vm0 = vcmp.eq.s32.totalorder %v274_v49, %v877_v22 }
 0x14f   :  { %v506_v46 = vpop.eup %505  ;;  %v442_v12 = vsel %vm289_vm15, 1.0, %v580_v40  ;;  %v443_v24 = vsel %vm290_vm0, 1.0, %v580_v40  ;;  %v202_v40 = vmul.f32 %v502_v45, %v813_v48  ;;  %v327_v48 = vsel %vm279_vm5, %v197_v57, 0.0 }
 0x150   :  { %v508_v53 = vpop.eup %507  ;;  %v377_v58 = vadd.f32 %v442_v12, %v434_v39  ;;  %v378_v62 = vadd.f32 %v443_v24, %v435_v41  ;;  %v204_v2 = vmul.f32 %v506_v46, %v821_v52  ;;  %v355_v52 = vadd.f32 %v201_v50, %v193_v33 }
 0x151   :  { %v205_v1 = vmul.f32 %v508_v53, %v827_v55  ;;  %v330_v55 = vsel %vm282_vm14, %v200_v35, 0.0  ;;  %v332_v4 = vsel %vm284_vm3, %v202_v40, 0.0  ;;  %v333_v5 = vsel %vm285_vm12, %v203_v44, 0.0 }
 0x152   :  { %v381_v0 = vadd.f32 %v377_v58, %v373_v26  ;;  %v382_v19 = vadd.f32 %v378_v62, %v374_v34  ;;  %v357_v9 = vadd.f32 %v203_v44, %v195_v25  ;;  %v334_v16 = vsel %vm286_vm11, %v204_v2, 0.0 }
 0x153   :  { %v510_v20 = vpop.eup %509  ;;  %v335_v8 = vsel %vm287_vm8, %v205_v1, 0.0  ;;  %v359_v14 = vadd.f32 %v205_v1, %v197_v57  ;;  %v341_v13 = vadd.f32 %v333_v5, %v325_v43  ;;  %v356_v38 = vadd.f32 %v202_v40, %v194_v42 }
 0x154   :  { %v512_v51 = vpop.eup %511  ;;  %v206_v17 = vmul.f32 %v510_v20, %v829_v56  ;;  %v383_v18 = vadd.f32 %v381_v0, %v379_v47  ;;  %v384_v6 = vadd.f32 %v382_v19, %v380_v37  ;;  %v343_v39 = vadd.f32 %v335_v8, %v327_v48 }
 0x155   :  { %v207_v27 = vmul.f32 %v512_v51, %v835_v59  ;;  %v358_v45 = vadd.f32 %v204_v2, %v196_v29  ;;  %v342_v15 = vadd.f32 %v334_v16, %v326_v63  ;;  %v340_v54 = vadd.f32 %v332_v4, %v324_v7 }
 0x156   :  { %v336_v56 = vsel %vm288_vm4, %v206_v17, 0.0  ;;  %v385_v31 = vadd.f32 %v384_v6, %v383_v18  ;;  %v360_v37 = vadd.f32 %v206_v17, %v198_v30 }
 0x157   :  { %v514_v59 = vpop.eup %513  ;;  %v337_v32 = vsel %vm289_vm15, %v207_v27, 0.0  ;;  %v361_v33 = vadd.f32 %v207_v27, %v199_v61  ;;  %v344_v41 = vadd.f32 %v336_v56, %v328_v10  ;;  %v347_v61 = vadd.f32 %v343_v39, %v339_v28 }
 0x158   :  { %v345_v21 = vadd.f32 %v337_v32, %v329_v3  ;;  %v208_v34 = vmul.f32 %v514_v59, %v837_v60  ;;  %386 = vst.msk [vmem:[#allocation6] sm:$0xff] %vm1051_vm1, %v385_v31  ;;  %v363_v60 = vadd.f32 %v359_v14, %v355_v52  ;;  %v364_v57 = vadd.f32 %v360_v37, %v356_v38 }
 0x159   :  { %v365_v26 = vadd.f32 %v361_v33, %v357_v9  ;;  %v348_v42 = vadd.f32 %v344_v41, %v340_v54 }
 0x15a   :  { %v362_v47 = vadd.f32 %v208_v34, %v200_v35  ;;  %v338_v11 = vsel %vm290_vm0, %v208_v34, 0.0  ;;  %v349_v25 = vadd.f32 %v345_v21, %v341_v13  ;;  %vm1052_vm0 = vmmov %vm1051_vm1 }
 0x15b   :  { %v346_v50 = vadd.f32 %v338_v11, %v330_v55  ;;  %v367_v12 = vadd.f32 %v365_v26, %v363_v60 }
 0x15c   :  { %v366_v23 = vadd.f32 %v362_v47, %v358_v45  ;;  %v351_v29 = vadd.f32 %v349_v25, %v347_v61 }
 0x15d   :  { %v350_v46 = vadd.f32 %v346_v50, %v342_v15 }
 0x15e   :  { %v368_v24 = vadd.f32 %v366_v23, %v364_v57 }
 0x15f   :  { %v352_v30 = vadd.f32 %v350_v46, %v348_v42 }
 0x160   :  { %v369_v22 = vadd.f32 %v368_v24, %v367_v12 }
 0x161   :  { %v353_v49 = vadd.f32 %v352_v30, %v351_v29 }
 0x162   :  { %370 = vst.msk [vmem:[#allocation4] sm:$0xff] %vm1052_vm0, %v369_v22 }
 0x163   :  { %526 = shalt.err (!%p523_p4)
}
 0x164   :  { %406 = dma.vmem_to_hbm [thread:$0]  %s404_s25, 128, %s1048_s3, [#allocation5]   ;;  %vm1053_vm2 = vmmov %vm1052_vm0 }
 0x165   :  { %354 = vst.msk [vmem:[#allocation2] sm:$0xff] %vm1053_vm2, %v353_v49  ;;  %s535_s7 = scalar_lea.vmem %s394_s27, 128  ;;  %p540_p6 = scmp.lt.s32.totalorder %s394_s27, %s394_s27 }
 0x166   :  { %p536_p5 = scmp.ne.s32.totalorder %s394_s27, %s535_s7  ;;  %p541_p7 = scmp.lt.s32.totalorder %s535_s7, %s535_s7 }
 0x168   :  { %p542_p8 = por %p541_p7, %p540_p6 }
 0x16a   :  { %p543_p9 = pnand %p542_p8, %p536_p5 }
 0x16c   :  { %546 = shalt.err (!%p543_p9)
}
 0x16d   :  { %396 = dma.vmem_to_hbm [thread:$0]  %s394_s27, 128, %s1047_s2, [#allocation3]  }
 0x16e   :  { %s555_s10 = scalar_lea.vmem %s414_s29, 128  ;;  %p560_p11 = scmp.lt.s32.totalorder %s414_s29, %s414_s29 }
 0x16f   :  { %p556_p10 = scmp.ne.s32.totalorder %s414_s29, %s555_s10  ;;  %p561_p12 = scmp.lt.s32.totalorder %s555_s10, %s555_s10 }
 0x171   :  { %p562_p13 = por %p561_p12, %p560_p11 }
 0x173   :  { %p563_p0 = pnand %p562_p13, %p556_p10 }
 0x175   :  { %566 = shalt.err (!%p563_p0)
}
 0x176   :  { %416 = dma.vmem_to_hbm [thread:$0]  %s414_s29, 128, %s1049_s4, [#allocation5]  }
 0x177   :  { %575 = dma.done.wait [#allocation3], 128  }
 0x178   :  { %576 = vsyncadd [#allocation3], 4294967168 }
 0x179   :  { %577 = dma.done.wait [#allocation5], 256  }
 0x17a   :  { %578 = vsyncadd [#allocation5], 4294967040 }
 0x17b   :  { %426 = vsyncpa [#allocation3], 1 }
 0x17c   :  { %427 = vsyncpa [#allocation5], 1 }

</bundles_post_ra>
